<compile_context>
chip_gen: v6e
topology: v6e:2x2x1
jax: 0.10.0
libtpu: 0.0.40
codegen_flags: <defaults>
</compile_context>

<pallas_src>
import math

import jax
import jax.numpy as jnp
from jax.experimental import pallas as pl
from jax.experimental.pallas import tpu as pltpu


FIRST_SIZE = 2
SECOND_SIZE = 256
_LAST_DIM = FIRST_SIZE * SECOND_SIZE  # 512

_TARGET_BUFFER_BYTES = 2 << 20  # ~2 MiB per double-buffered tile (all gens)
_MIN_PIPELINE_STEPS = 4         # enough steps that DMA in/out overlap compute


def _copy_kernel(x_ref, o_ref):
    # Identity copy of one (tb, 512) tile; purely HBM/DMA bound.
    o_ref[...] = x_ref[...]


def _round_up(v, m):
    return ((v + m - 1) // m) * m


def _pick_tile_rows(n_rows, itemsize):
    """Row-tile height: ~2 MiB per buffer, multiple of 8, >=4 grid steps."""
    row_bytes = _LAST_DIM * itemsize
    tb = max(8, (_TARGET_BUFFER_BYTES // row_bytes) // 8 * 8)
    # Once there is enough work, cap the tile so the grid has at least
    # _MIN_PIPELINE_STEPS steps -> input/output DMA pipelines with compute.
    if n_rows >= _MIN_PIPELINE_STEPS * 128:
        tb = min(tb, max(128, _round_up(pl.cdiv(n_rows, _MIN_PIPELINE_STEPS), 8)))
    # Full extent is always legal; otherwise tb is already a multiple of 8.
    if tb >= n_rows:
        tb = n_rows
    return tb


def view_forward(x, y=None, *, materialize=False):
    """x: [..., 512] -> [..., 2, 256] (same bytes, new shape). y is unused.

    materialize=False (default): metadata-only reshape, zero data movement.
    materialize=True: Pallas identity-copy kernel producing a fresh buffer.
    """
    del y  # Present only to mirror the PyTorch forward(x, y) signature.
    assert x.shape[-1] == _LAST_DIM, (
        f"last dim must be {_LAST_DIM} (= {FIRST_SIZE}*{SECOND_SIZE}), "
        f"got {x.shape[-1]}")
    new_shape = x.shape[:-1] + (FIRST_SIZE, SECOND_SIZE)

    # Recommended path: a view is pure metadata.  No kernel, no HBM traffic.
    if not materialize:
        return jnp.reshape(x, new_shape)

    # Materializing path: lane-dense, row-tiled, pipelined identity copy.
    n_rows = math.prod(x.shape[:-1]) if x.shape[:-1] else 1
    x_flat = jnp.reshape(x, (n_rows, _LAST_DIM))

    itemsize = jnp.dtype(x.dtype).itemsize
    tb = _pick_tile_rows(n_rows, itemsize)
    grid = (pl.cdiv(n_rows, tb),)

    out_flat = pl.pallas_call(
        _copy_kernel,
        out_shape=jax.ShapeDtypeStruct((n_rows, _LAST_DIM), x.dtype),
        grid=grid,
        in_specs=[pl.BlockSpec((tb, _LAST_DIM), lambda i: (i, 0))],
        out_specs=pl.BlockSpec((tb, _LAST_DIM), lambda i: (i, 0)),
        compiler_params=pltpu.CompilerParams(
            # Row tiles are independent: shard across v7x's two TensorCores
            # (harmless no-op on single-TC v5e/v6e).
            dimension_semantics=("parallel",),
        ),
        # Pure memory traffic: 1 read + 1 write of x's bytes.
        cost_estimate=pl.CostEstimate(
            flops=0,
            transcendentals=0,
            bytes_accessed=2 * x_flat.size * itemsize,
        ),
    )(x_flat)

    # Metadata-only reshape to the PyTorch view shape.
    return jnp.reshape(out_flat, new_shape)


if __name__ == "__main__":
    key = jax.random.PRNGKey(0)
    k_x, k_y = jax.random.split(key, 2)

    # Small shapes consistent with the module: last dim must be 2*256 = 512.
    x = jax.random.normal(k_x, (2, 8, 512), dtype=jnp.float32)
    y = jax.random.normal(k_y, (2, 8), dtype=jnp.float32)  # unused by forward

    ref = jnp.reshape(x, (2, 8, FIRST_SIZE, SECOND_SIZE))

    # Default (fastest) path: metadata-only reshape.
    out_fast = jax.block_until_ready(view_forward(x, y))
    assert out_fast.shape == (2, 8, 2, 256), out_fast.shape
    assert jnp.array_equal(out_fast, ref), "reshape path mismatch vs reference"

    # Pallas copy path (fresh output buffer), run once and verified.
    out_copy = jax.block_until_ready(view_forward(x, y, materialize=True))
    assert out_copy.shape == (2, 8, 2, 256), out_copy.shape
    assert jnp.array_equal(out_copy, ref), "pallas path mismatch vs reference"

    print("KERNEL_OK")
</pallas_src>

<mosaic_0001>
module attributes {stable_mosaic.version = 11 : i64} {
  func.func @_copy_kernel(%arg0: i32, %arg1: memref<16x512xf32, #tpu.memory_space<vmem>>, %arg2: memref<16x512xf32, #tpu.memory_space<vmem>>) attributes {dimension_semantics = [#tpu.dimension_semantics<parallel>], iteration_bounds = array<i64: 1>, scalar_prefetch = 0 : i64, scratch_operands = 0 : i64, tpu.core_type = #tpu.core_type<tc>, window_params = [{transform_indices = @transform_0, window_bounds = array<i64: 16, 512>}, {transform_indices = @transform_1, window_bounds = array<i64: 16, 512>}]} {
    %c0 = arith.constant 0 : index
    %c0_0 = arith.constant 0 : index
    %0 = vector.load %arg1[%c0, %c0_0] : memref<16x512xf32, #tpu.memory_space<vmem>>, vector<16x512xf32>
    %c0_1 = arith.constant 0 : index
    %c0_2 = arith.constant 0 : index
    %1 = vector.load %arg2[%c0_1, %c0_2] : memref<16x512xf32, #tpu.memory_space<vmem>>, vector<16x512xf32>
    tpu.vector_store %arg2[%c0_1, %c0_2], %0 {strides = array<i32>} : memref<16x512xf32, #tpu.memory_space<vmem>>, vector<16x512xf32>,
    return
  }
  func.func @transform_0(%arg0: i32) -> (i32, i32) {
    %c0_i32 = arith.constant 0 : i32
    %c0_i32_0 = arith.constant 0 : i32
    return %arg0, %c0_i32 : i32, i32
  }
  func.func @transform_1(%arg0: i32) -> (i32, i32) {
    %c0_i32 = arith.constant 0 : i32
    %c0_i32_0 = arith.constant 0 : i32
    return %arg0, %c0_i32 : i32, i32
  }
}

</mosaic_0001>

<bundles_post_ra>
// kernel: tpu_custom_call.1
= control target key start
LH: loop header
LB: loop body
LE: loop exit
PB: predicated region body
PF: predicated region fallthrough
CT: control target
= control target key end

     0   :  { %6 = vsyncpa [#allocation3], 0  ;;  %s130_s0 = inlined_call_operand.hbm [shape: f32[16,512], index: 0, kind: input, shape index: {}]   ;;  %s131_s1 = inlined_call_operand.hbm [shape: f32[16,512], index: 1, kind: output, shape index: {}]  }
   0x1   :  { %7 = vsyncpa [#allocation4], 0  ;;  %s104_s6 = smov [#allocation2]  }
   0x2   :  { %s13_s7 = sshll.u32 %s104_s6, 4  ;;  %s14_s7 = int_to_ptr.vmem [resolvable:$true] %s13_s7 }
   0x3   :  { %s68_s8 = scalar_lea.vmem %s14_s7, 1024  ;;  %p73_p1 = scmp.lt.s32.totalorder %s14_s7, %s14_s7 }
   0x4   :  { %p69_p0 = scmp.ne.s32.totalorder %s14_s7, %s68_s8  ;;  %p74_p2 = scmp.lt.s32.totalorder %s68_s8, %s68_s8 }
   0x6   :  { %p75_p3 = por %p74_p2, %p73_p1 }
   0x8   :  { %p76_p4 = pnand %p75_p3, %p69_p0 }
   0xa   :  { %79 = shalt.err (!%p76_p4)
}
   0xb   :  { %s105_s9 = smov 512   ;;  %s106_s10 = smov 32  }
   0xc   :  { %19 = dma.hbm_to_vmem [thread:$0]  %s130_s0, 1024, %s14_s7, [#allocation3], %s105_s9, %s105_s9, %s106_s10  }
   0xd   :  { %100 = dma.done.wait [#allocation3], 1024  }
   0xe   :  { %101 = vsyncadd [#allocation3], 4294966272  ;;  %s107_s13 = smov [#allocation5]   ;;  %v23_v0 = vld [vmem:[#allocation2] sm:$0xff]  ;;  %v24_v1 = vld [vmem:[#allocation2 + $0x8] sm:$0xff] }
   0xf   :  { %s44_s14 = sshll.u32 %s107_s13, 4  ;;  %v25_v2 = vld [vmem:[#allocation2 + $0x10] sm:$0xff]  ;;  %31 = vst [vmem:[#allocation5] sm:$0xff] %v23_v0  ;;  %32 = vst [vmem:[#allocation5 + $0x8] sm:$0xff] %v24_v1  ;;  %v26_v3 = vld [vmem:[#allocation2 + $0x18] sm:$0xff]  ;;  %s45_s14 = int_to_ptr.vmem [resolvable:$true] %s44_s14 }
  0x10   :  { %33 = vst [vmem:[#allocation5 + $0x10] sm:$0xff] %v25_v2  ;;  %v27_v4 = vld [vmem:[#allocation2 + $0x20] sm:$0xff]  ;;  %v28_v5 = vld [vmem:[#allocation2 + $0x28] sm:$0xff]  ;;  %34 = vst [vmem:[#allocation5 + $0x18] sm:$0xff] %v26_v3  ;;  %s80_s0 = scalar_lea.vmem %s45_s14, 1024  ;;  %p85_p6 = scmp.lt.s32.totalorder %s45_s14, %s45_s14 }
  0x11   :  { %35 = vst [vmem:[#allocation5 + $0x20] sm:$0xff] %v27_v4  ;;  %36 = vst [vmem:[#allocation5 + $0x28] sm:$0xff] %v28_v5  ;;  %v29_v6 = vld [vmem:[#allocation2 + $0x30] sm:$0xff]  ;;  %v30_v7 = vld [vmem:[#allocation2 + $0x38] sm:$0xff]  ;;  %p81_p5 = scmp.ne.s32.totalorder %s45_s14, %s80_s0  ;;  %p86_p7 = scmp.lt.s32.totalorder %s80_s0, %s80_s0 }
  0x12   :  { %37 = vst [vmem:[#allocation5 + $0x30] sm:$0xff] %v29_v6  ;;  %38 = vst [vmem:[#allocation5 + $0x38] sm:$0xff] %v30_v7 }
  0x13   :  { %p87_p8 = por %p86_p7, %p85_p6 }
  0x15   :  { %p88_p9 = pnand %p87_p8, %p81_p5 }
  0x17   :  { %91 = shalt.err (!%p88_p9)
}
  0x18   :  { %50 = dma.vmem_to_hbm [thread:$0]  %s45_s14, 1024, %s131_s1, [#allocation4], %s105_s9, %s105_s9, %s106_s10  }
  0x19   :  { %102 = dma.done.wait [#allocation4], 1024  }
  0x1a   :  { %103 = vsyncadd [#allocation4], 4294966272 }
  0x1b   :  { %54 = vsyncpa [#allocation3], 1 }
  0x1c   :  { %55 = vsyncpa [#allocation4], 1 }

</bundles_post_ra>
